<compile_context>
chip_gen: v6e
topology: v6e:2x2x1
jax: 0.10.0
libtpu: 0.0.40
codegen_flags: <defaults>
</compile_context>

<pallas_src>
import math

import jax
import jax.numpy as jnp
from jax import lax
from jax.experimental import pallas as pl
from jax.experimental.pallas import tpu as pltpu


def attention_head_kernel(q_ref, k_ref, v_ref,
                          wq_ref, bq_ref, wk_ref, bk_ref, wv_ref, bv_ref,
                          o_ref,
                          q_sc, m_sc, l_sc, acc_sc):
    ki = pl.program_id(2)
    bt, tq, d_model = q_ref.shape
    tkv = k_ref.shape[1]
    d_k = o_ref.shape[-1]

    # --- q projection: once per (batch tile, q tile); cached in bf16 scratch ----
    # The 1/sqrt(d_k) scale is already folded into wq/bq host-side.
    @pl.when(ki == 0)
    def _():
        xq = q_ref[...].astype(jnp.bfloat16).reshape(bt * tq, d_model)
        q_ = jnp.dot(xq, wq_ref[...], preferred_element_type=jnp.float32) + bq_ref[...]
        q_sc[...] = q_.reshape(bt, tq, d_k).astype(jnp.bfloat16)
        m_sc[...] = jnp.full(m_sc.shape, -jnp.inf, m_sc.dtype)
        l_sc[...] = jnp.zeros(l_sc.shape, l_sc.dtype)
        acc_sc[...] = jnp.zeros(acc_sc.shape, acc_sc.dtype)

    # --- k / v projection for this kv tile (separate weights -> no cross terms) -
    xk = k_ref[...].astype(jnp.bfloat16).reshape(bt * tkv, d_model)
    xv = v_ref[...].astype(jnp.bfloat16).reshape(bt * tkv, d_model)
    k_ = (jnp.dot(xk, wk_ref[...], preferred_element_type=jnp.float32)
          + bk_ref[...]).reshape(bt, tkv, d_k).astype(jnp.bfloat16)
    v_ = (jnp.dot(xv, wv_ref[...], preferred_element_type=jnp.float32)
          + bv_ref[...]).reshape(bt, tkv, d_k).astype(jnp.bfloat16)

    # --- online softmax over the kv axis -----------------------------------------
    # scores = q_ @ k_^T, batched over bt; contraction on the last dims avoids an
    # explicit transpose of k_.
    s = lax.dot_general(q_sc[...], k_,
                        dimension_numbers=(((2,), (2,)), ((0,), (0,))),
                        preferred_element_type=jnp.float32)
    m_prev = m_sc[...]
    m_new = jnp.maximum(m_prev, jnp.max(s, axis=-1, keepdims=True))
    alpha = jnp.exp(m_prev - m_new)
    p = jnp.exp(s - m_new)                      # un-normalized probabilities
    l_sc[...] = alpha * l_sc[...] + jnp.sum(p, axis=-1, keepdims=True)
    pv = lax.dot_general(p.astype(jnp.bfloat16), v_,
                         dimension_numbers=(((2,), (1,)), ((0,), (0,))),
                         preferred_element_type=jnp.float32)
    acc_sc[...] = alpha * acc_sc[...] + pv
    m_sc[...] = m_new

    # --- finalize: normalize AFTER the PV matmul (O(S*d_k), not O(S^2)) ----------
    @pl.when(ki == pl.num_programs(2) - 1)
    def _():
        o_ref[...] = (acc_sc[...] * pl.reciprocal(l_sc[...], approx=True)
                      ).astype(o_ref.dtype)


def _vmem_bytes(bt, tq, tkv, d_model, d_k, itemsize):
    """Rough VMEM footprint estimate (lane-padded minor dims, double-buffered I/O)."""
    lane = 128
    dkp = max(d_k, lane)
    dmp = max(d_model, lane)
    buf = 2  # Pallas double-buffering of pipelined operands
    seq_in = buf * bt * (tq + 2 * tkv) * dmp * itemsize
    out = buf * bt * tq * dkp * itemsize
    weights = 3 * d_model * dkp * 2 + 3 * dkp * 4          # resident bf16 W + f32 b
    scratch = bt * tq * (dkp * 2 + dkp * 4 + 2 * lane * 4)  # q_sc, acc, m, l
    tmp = (bt * tq * max(tkv, lane) * (4 + 4 + 2)            # scores f32, p f32+bf16
           + 2 * bt * tkv * dkp * 2)                          # k_, v_ bf16 tiles
    return seq_in + out + weights + scratch + tmp


def _pick_tiles(B, S, d_model, d_k, itemsize,
                bt=None, tq=None, tkv=None, vmem_budget=24 << 20):
    """VMEM-budget-derived (bt, tq, tkv).

    Preference order: fewest serial kv steps, then keep >= 2 parallel grid steps
    (v7x has 2 TensorCores; costs at most one extra ~0.35us step on 1-TC parts),
    then fewest total steps, then biggest tiles. 24 MiB budget stays safely inside
    v7x's 64 MiB/TC and the 32 MiB scoped default on v6e/v7x.
    """
    if bt is not None and tq is not None and tkv is not None:
        return bt, tq, tkv

    def seq_tiles(n):
        cands = [t for t in range(8, min(n, 512) + 1, 8) if n % t == 0]
        return cands or [n]

    tq_opts = [tq] if tq is not None else seq_tiles(S)
    tkv_opts = [tkv] if tkv is not None else seq_tiles(S)
    bt_opts = [bt] if bt is not None else [d for d in range(1, B + 1) if B % d == 0]

    best = None
    for tkv_c in tkv_opts:
        for tq_c in tq_opts:
            for bt_c in bt_opts:
                if _vmem_bytes(bt_c, tq_c, tkv_c, d_model, d_k, itemsize) > vmem_budget:
                    continue
                kv_steps = S // tkv_c
                par_steps = (B // bt_c) * (S // tq_c)
                key = (kv_steps,
                       0 if par_steps >= 2 else 1,
                       kv_steps * par_steps,
                       -(bt_c * tq_c), -tkv_c)
                if best is None or key < best[0]:
                    best = (key, (bt_c, tq_c, tkv_c))
    if best is None:
        t = 8 if S % 8 == 0 else S
        return 1, t, t
    return best[1]


def attention_head(q, k, v, wq, bq, wk, bk, wv, bv, *,
                   bt=None, tq=None, tkv=None, interpret=False):
    """q, k, v: (B, S, d_model). Weights: (d_model, d_k) (pre-transposed vs the
    PyTorch nn.Linear layout). Biases: (1, d_k). Returns (B, S, d_k) in q.dtype."""
    B, S, d_model = q.shape
    d_k = wq.shape[1]

    # Host-side constant folds: 1/sqrt(d_k) into the q projection; weights to bf16
    # (MXU operand dtype) once, instead of per-step in-kernel casts.
    scale = 1.0 / math.sqrt(d_k)
    wq_b = (wq.astype(jnp.float32) * scale).astype(jnp.bfloat16)
    bq_f = bq.astype(jnp.float32) * scale
    wk_b = wk.astype(jnp.bfloat16)
    bk_f = bk.astype(jnp.float32)
    wv_b = wv.astype(jnp.bfloat16)
    bv_f = bv.astype(jnp.float32)

    bt, tq, tkv = _pick_tiles(B, S, d_model, d_k, q.dtype.itemsize, bt, tq, tkv)
    assert B % bt == 0 and S % tq == 0 and S % tkv == 0, (bt, tq, tkv)

    grid = (B // bt, S // tq, S // tkv)

    q_spec = pl.BlockSpec((bt, tq, d_model), lambda b, i, j: (b, i, 0))
    kv_spec = pl.BlockSpec((bt, tkv, d_model), lambda b, i, j: (b, j, 0))
    # Constant index maps -> weights/biases stay resident in VMEM (no per-step DMA).
    w_spec = pl.BlockSpec((d_model, d_k), lambda b, i, j: (0, 0))
    b_spec = pl.BlockSpec((1, d_k), lambda b, i, j: (0, 0))
    out_spec = pl.BlockSpec((bt, tq, d_k), lambda b, i, j: (b, i, 0))

    est = _vmem_bytes(bt, tq, tkv, d_model, d_k, q.dtype.itemsize)
    vmem_limit = int(min(64 << 20, max(32 << 20, 2 * est)))

    return pl.pallas_call(
        attention_head_kernel,
        out_shape=jax.ShapeDtypeStruct((B, S, d_k), q.dtype),
        grid_spec=pltpu.PrefetchScalarGridSpec(
            num_scalar_prefetch=0,
            grid=grid,
            in_specs=[q_spec, kv_spec, kv_spec,
                      w_spec, b_spec, w_spec, b_spec, w_spec, b_spec],
            out_specs=out_spec,
            scratch_shapes=[
                pltpu.VMEM((bt, tq, d_k), jnp.bfloat16),   # cached q_ tile (pre-scaled)
                pltpu.VMEM((bt, tq, 1), jnp.float32),      # running max m
                pltpu.VMEM((bt, tq, 1), jnp.float32),      # running denom l
                pltpu.VMEM((bt, tq, d_k), jnp.float32),    # output accumulator
            ]),
        compiler_params=pltpu.CompilerParams(
            dimension_semantics=("parallel", "parallel", "arbitrary"),
            vmem_limit_bytes=vmem_limit),
        interpret=interpret,
    )(q, k, v, wq_b, bq_f, wk_b, bk_f, wv_b, bv_f)


def reference(q, k, v, wq, bq, wk, bk, wv, bv):
    q_ = q @ wq + bq
    k_ = k @ wk + bk
    v_ = v @ wv + bv
    d_k = q_.shape[-1]
    s = jnp.einsum("bqd,bkd->bqk", q_, k_) / jnp.sqrt(jnp.float32(d_k))
    p = jnp.exp(s)
    p = p / p.sum(-1, keepdims=True)
    return jnp.einsum("bqk,bkd->bqd", p, v_)


if __name__ == "__main__":
    B, S, d_model, d_k = 2, 32, 32, 16
    key = jax.random.PRNGKey(0)
    ks = jax.random.split(key, 9)

    q = jax.random.normal(ks[0], (B, S, d_model), dtype=jnp.float32)
    k = jax.random.normal(ks[1], (B, S, d_model), dtype=jnp.float32)
    v = jax.random.normal(ks[2], (B, S, d_model), dtype=jnp.float32)

    # Deterministic nn.Linear-style init: U(-1/sqrt(d_model), 1/sqrt(d_model)).
    bound = 1.0 / (d_model ** 0.5)
    wq = jax.random.uniform(ks[3], (d_model, d_k), jnp.float32, -bound, bound)
    wk = jax.random.uniform(ks[4], (d_model, d_k), jnp.float32, -bound, bound)
    wv = jax.random.uniform(ks[5], (d_model, d_k), jnp.float32, -bound, bound)
    bq = jax.random.uniform(ks[6], (1, d_k), jnp.float32, -bound, bound)
    bk = jax.random.uniform(ks[7], (1, d_k), jnp.float32, -bound, bound)
    bv = jax.random.uniform(ks[8], (1, d_k), jnp.float32, -bound, bound)

    ref = reference(q, k, v, wq, bq, wk, bk, wv, bv)

    # Explicit small tiles: exercises the multi-step online-softmax kv accumulation.
    out_tiled = attention_head(q, k, v, wq, bq, wk, bk, wv, bv, bt=1, tq=8, tkv=8)
    # Auto (VMEM-budget) tiling.
    out_auto = attention_head(q, k, v, wq, bq, wk, bk, wv, bv)
    out_tiled, out_auto = jax.block_until_ready((out_tiled, out_auto))

    assert out_tiled.shape == (B, S, d_k) and out_auto.shape == (B, S, d_k)
    # bf16 MXU operands (f32 accumulation) + approx reciprocal => relaxed tolerance.
    assert jnp.allclose(out_tiled, ref, atol=5e-2, rtol=5e-2), "tiled mismatch vs reference"
    assert jnp.allclose(out_auto, ref, atol=5e-2, rtol=5e-2), "auto mismatch vs reference"

    print("KERNEL_OK")
</pallas_src>

<mosaic_0001>
module attributes {stable_mosaic.version = 11 : i64} {
  func.func @attention_head_kernel(%arg0: i32, %arg1: i32, %arg2: i32, %arg3: memref<1x8x32xf32, #tpu.memory_space<vmem>>, %arg4: memref<1x8x32xf32, #tpu.memory_space<vmem>>, %arg5: memref<1x8x32xf32, #tpu.memory_space<vmem>>, %arg6: memref<32x16xbf16, #tpu.memory_space<vmem>>, %arg7: memref<1x16xf32, #tpu.memory_space<vmem>>, %arg8: memref<32x16xbf16, #tpu.memory_space<vmem>>, %arg9: memref<1x16xf32, #tpu.memory_space<vmem>>, %arg10: memref<32x16xbf16, #tpu.memory_space<vmem>>, %arg11: memref<1x16xf32, #tpu.memory_space<vmem>>, %arg12: memref<1x8x16xf32, #tpu.memory_space<vmem>>, %arg13: memref<1x8x16xbf16, #tpu.memory_space<vmem>>, %arg14: memref<1x8x1xf32, #tpu.memory_space<vmem>>, %arg15: memref<1x8x1xf32, #tpu.memory_space<vmem>>, %arg16: memref<1x8x16xf32, #tpu.memory_space<vmem>>) attributes {dimension_semantics = [#tpu.dimension_semantics<parallel>, #tpu.dimension_semantics<parallel>, #tpu.dimension_semantics<arbitrary>], iteration_bounds = array<i64: 2, 4, 4>, scalar_prefetch = 0 : i64, scratch_operands = 4 : i64, tpu.core_type = #tpu.core_type<tc>, window_params = [{transform_indices = @transform_0, window_bounds = array<i64: 1, 8, 32>}, {transform_indices = @transform_1, window_bounds = array<i64: 1, 8, 32>}, {transform_indices = @transform_2, window_bounds = array<i64: 1, 8, 32>}, {pipeline_mode = #tpu.pipeline_mode<synchronous>, transform_indices = @transform_3, window_bounds = array<i64: 32, 16>}, {pipeline_mode = #tpu.pipeline_mode<synchronous>, transform_indices = @transform_4, window_bounds = array<i64: 1, 16>}, {pipeline_mode = #tpu.pipeline_mode<synchronous>, transform_indices = @transform_5, window_bounds = array<i64: 32, 16>}, {pipeline_mode = #tpu.pipeline_mode<synchronous>, transform_indices = @transform_6, window_bounds = array<i64: 1, 16>}, {pipeline_mode = #tpu.pipeline_mode<synchronous>, transform_indices = @transform_7, window_bounds = array<i64: 32, 16>}, {pipeline_mode = #tpu.pipeline_mode<synchronous>, transform_indices = @transform_8, window_bounds = array<i64: 1, 16>}, {transform_indices = @transform_9, window_bounds = array<i64: 1, 8, 16>}]} {
    %c0_i32 = arith.constant 0 : i32
    %0 = arith.cmpi eq, %arg2, %c0_i32 : i32
    %1 = arith.extui %0 : i1 to i32
    %c0_i32_0 = arith.constant 0 : i32
    %2 = arith.cmpi ne, %1, %c0_i32_0 : i32
    scf.if %2 {
      %c0_41 = arith.constant 0 : index
      %c0_42 = arith.constant 0 : index
      %c0_43 = arith.constant 0 : index
      %51 = vector.load %arg3[%c0_41, %c0_42, %c0_43] : memref<1x8x32xf32, #tpu.memory_space<vmem>>, vector<1x8x32xf32>
      %52 = arith.truncf %51 : vector<1x8x32xf32> to vector<1x8x32xbf16>
      %53 = vector.shape_cast %52 : vector<1x8x32xbf16> to vector<8x32xbf16>
      %c0_44 = arith.constant 0 : index
      %c0_45 = arith.constant 0 : index
      %54 = vector.load %arg6[%c0_44, %c0_45] : memref<32x16xbf16, #tpu.memory_space<vmem>>, vector<32x16xbf16>
      %cst_46 = arith.constant dense<0.000000e+00> : vector<8x16xf32>
      %55 = tpu.matmul %53, %54, %cst_46 {dimension_numbers = #tpu.dot_dimension_numbers<[1], [0], [0], [1], [0, 0, 1, 1], [], []>} : vector<8x32xbf16>, vector<32x16xbf16>, vector<8x16xf32> -> vector<8x16xf32>
      %c0_47 = arith.constant 0 : index
      %c0_48 = arith.constant 0 : index
      %56 = vector.load %arg7[%c0_47, %c0_48] : memref<1x16xf32, #tpu.memory_space<vmem>>, vector<1x16xf32>
      %57 = vector.broadcast %56 : vector<1x16xf32> to vector<8x16xf32>
      %58 = arith.addf %55, %57 : vector<8x16xf32>
      %59 = vector.shape_cast %58 : vector<8x16xf32> to vector<1x8x16xf32>
      %60 = arith.truncf %59 : vector<1x8x16xf32> to vector<1x8x16xbf16>
      %c0_49 = arith.constant 0 : index
      %c0_50 = arith.constant 0 : index
      %c0_51 = arith.constant 0 : index
      %61 = vector.load %arg13[%c0_49, %c0_50, %c0_51] : memref<1x8x16xbf16, #tpu.memory_space<vmem>>, vector<1x8x16xbf16>
      tpu.vector_store %arg13[%c0_49, %c0_50, %c0_51], %60 {strides = array<i32>} : memref<1x8x16xbf16, #tpu.memory_space<vmem>>, vector<1x8x16xbf16>,
      %cst_52 = arith.constant 0xFF800000 : f32
      %62 = vector.broadcast %cst_52 : f32 to vector<1x8x1xf32>
      %c0_53 = arith.constant 0 : index
      %c0_54 = arith.constant 0 : index
      %c0_55 = arith.constant 0 : index
      %63 = vector.load %arg14[%c0_53, %c0_54, %c0_55] : memref<1x8x1xf32, #tpu.memory_space<vmem>>, vector<1x8x1xf32>
      tpu.vector_store %arg14[%c0_53, %c0_54, %c0_55], %62 {strides = array<i32>} : memref<1x8x1xf32, #tpu.memory_space<vmem>>, vector<1x8x1xf32>,
      %cst_56 = arith.constant 0.000000e+00 : f32
      %64 = vector.broadcast %cst_56 : f32 to vector<1x8x1xf32>
      %c0_57 = arith.constant 0 : index
      %c0_58 = arith.constant 0 : index
      %c0_59 = arith.constant 0 : index
      %65 = vector.load %arg15[%c0_57, %c0_58, %c0_59] : memref<1x8x1xf32, #tpu.memory_space<vmem>>, vector<1x8x1xf32>
      tpu.vector_store %arg15[%c0_57, %c0_58, %c0_59], %64 {strides = array<i32>} : memref<1x8x1xf32, #tpu.memory_space<vmem>>, vector<1x8x1xf32>,
      %cst_60 = arith.constant 0.000000e+00 : f32
      %66 = vector.broadcast %cst_60 : f32 to vector<1x8x16xf32>
      %c0_61 = arith.constant 0 : index
      %c0_62 = arith.constant 0 : index
      %c0_63 = arith.constant 0 : index
      %67 = vector.load %arg16[%c0_61, %c0_62, %c0_63] : memref<1x8x16xf32, #tpu.memory_space<vmem>>, vector<1x8x16xf32>
      tpu.vector_store %arg16[%c0_61, %c0_62, %c0_63], %66 {strides = array<i32>} : memref<1x8x16xf32, #tpu.memory_space<vmem>>, vector<1x8x16xf32>,
    } else {
    }
    %c0 = arith.constant 0 : index
    %c0_1 = arith.constant 0 : index
    %c0_2 = arith.constant 0 : index
    %3 = vector.load %arg4[%c0, %c0_1, %c0_2] : memref<1x8x32xf32, #tpu.memory_space<vmem>>, vector<1x8x32xf32>
    %4 = arith.truncf %3 : vector<1x8x32xf32> to vector<1x8x32xbf16>
    %5 = vector.shape_cast %4 : vector<1x8x32xbf16> to vector<8x32xbf16>
    %c0_3 = arith.constant 0 : index
    %c0_4 = arith.constant 0 : index
    %c0_5 = arith.constant 0 : index
    %6 = vector.load %arg5[%c0_3, %c0_4, %c0_5] : memref<1x8x32xf32, #tpu.memory_space<vmem>>, vector<1x8x32xf32>
    %7 = arith.truncf %6 : vector<1x8x32xf32> to vector<1x8x32xbf16>
    %8 = vector.shape_cast %7 : vector<1x8x32xbf16> to vector<8x32xbf16>
    %c0_6 = arith.constant 0 : index
    %c0_7 = arith.constant 0 : index
    %9 = vector.load %arg8[%c0_6, %c0_7] : memref<32x16xbf16, #tpu.memory_space<vmem>>, vector<32x16xbf16>
    %cst = arith.constant dense<0.000000e+00> : vector<8x16xf32>
    %10 = tpu.matmul %5, %9, %cst {dimension_numbers = #tpu.dot_dimension_numbers<[1], [0], [0], [1], [0, 0, 1, 1], [], []>} : vector<8x32xbf16>, vector<32x16xbf16>, vector<8x16xf32> -> vector<8x16xf32>
    %c0_8 = arith.constant 0 : index
    %c0_9 = arith.constant 0 : index
    %11 = vector.load %arg9[%c0_8, %c0_9] : memref<1x16xf32, #tpu.memory_space<vmem>>, vector<1x16xf32>
    %12 = vector.broadcast %11 : vector<1x16xf32> to vector<8x16xf32>
    %13 = arith.addf %10, %12 : vector<8x16xf32>
    %14 = vector.shape_cast %13 : vector<8x16xf32> to vector<1x8x16xf32>
    %15 = arith.truncf %14 : vector<1x8x16xf32> to vector<1x8x16xbf16>
    %c0_10 = arith.constant 0 : index
    %c0_11 = arith.constant 0 : index
    %16 = vector.load %arg10[%c0_10, %c0_11] : memref<32x16xbf16, #tpu.memory_space<vmem>>, vector<32x16xbf16>
    %cst_12 = arith.constant dense<0.000000e+00> : vector<8x16xf32>
    %17 = tpu.matmul %8, %16, %cst_12 {dimension_numbers = #tpu.dot_dimension_numbers<[1], [0], [0], [1], [0, 0, 1, 1], [], []>} : vector<8x32xbf16>, vector<32x16xbf16>, vector<8x16xf32> -> vector<8x16xf32>
    %c0_13 = arith.constant 0 : index
    %c0_14 = arith.constant 0 : index
    %18 = vector.load %arg11[%c0_13, %c0_14] : memref<1x16xf32, #tpu.memory_space<vmem>>, vector<1x16xf32>
    %19 = vector.broadcast %18 : vector<1x16xf32> to vector<8x16xf32>
    %20 = arith.addf %17, %19 : vector<8x16xf32>
    %21 = vector.shape_cast %20 : vector<8x16xf32> to vector<1x8x16xf32>
    %22 = arith.truncf %21 : vector<1x8x16xf32> to vector<1x8x16xbf16>
    %c0_15 = arith.constant 0 : index
    %c0_16 = arith.constant 0 : index
    %c0_17 = arith.constant 0 : index
    %23 = vector.load %arg13[%c0_15, %c0_16, %c0_17] : memref<1x8x16xbf16, #tpu.memory_space<vmem>>, vector<1x8x16xbf16>
    %cst_18 = arith.constant dense<0.000000e+00> : vector<1x8x8xf32>
    %24 = tpu.matmul %23, %15, %cst_18 {dimension_numbers = #tpu.dot_dimension_numbers<[2], [2], [1], [1], [0, 0, 0, 1, 1, 1], [0], [0]>} : vector<1x8x16xbf16>, vector<1x8x16xbf16>, vector<1x8x8xf32> -> vector<1x8x8xf32>
    %c0_19 = arith.constant 0 : index
    %c0_20 = arith.constant 0 : index
    %c0_21 = arith.constant 0 : index
    %25 = vector.load %arg14[%c0_19, %c0_20, %c0_21] : memref<1x8x1xf32, #tpu.memory_space<vmem>>, vector<1x8x1xf32>
    %cst_22 = arith.constant dense<0xFF800000> : vector<1x8xf32>
    %26 = vector.multi_reduction <maximumf>, %24, %cst_22 [2] : vector<1x8x8xf32> to vector<1x8xf32>
    %27 = vector.shape_cast %26 : vector<1x8xf32> to vector<1x8x1xf32>
    %28 = arith.maximumf %25, %27 : vector<1x8x1xf32>
    %29 = arith.subf %25, %28 : vector<1x8x1xf32>
    %30 = math.exp %29 : vector<1x8x1xf32>
    %31 = vector.broadcast %28 : vector<1x8x1xf32> to vector<1x8x8xf32>
    %32 = arith.subf %24, %31 : vector<1x8x8xf32>
    %33 = math.exp %32 : vector<1x8x8xf32>
    %c0_23 = arith.constant 0 : index
    %c0_24 = arith.constant 0 : index
    %c0_25 = arith.constant 0 : index
    %34 = vector.load %arg15[%c0_23, %c0_24, %c0_25] : memref<1x8x1xf32, #tpu.memory_space<vmem>>, vector<1x8x1xf32>
    %35 = arith.mulf %30, %34 : vector<1x8x1xf32>
    %cst_26 = arith.constant dense<0.000000e+00> : vector<1x8xf32>
    %36 = vector.multi_reduction <add>, %33, %cst_26 [2] : vector<1x8x8xf32> to vector<1x8xf32>
    %37 = vector.shape_cast %36 : vector<1x8xf32> to vector<1x8x1xf32>
    %38 = arith.addf %35, %37 : vector<1x8x1xf32>
    %c0_27 = arith.constant 0 : index
    %c0_28 = arith.constant 0 : index
    %c0_29 = arith.constant 0 : index
    %39 = vector.load %arg15[%c0_27, %c0_28, %c0_29] : memref<1x8x1xf32, #tpu.memory_space<vmem>>, vector<1x8x1xf32>
    tpu.vector_store %arg15[%c0_27, %c0_28, %c0_29], %38 {strides = array<i32>} : memref<1x8x1xf32, #tpu.memory_space<vmem>>, vector<1x8x1xf32>,
    %40 = arith.truncf %33 : vector<1x8x8xf32> to vector<1x8x8xbf16>
    %cst_30 = arith.constant dense<0.000000e+00> : vector<1x8x16xf32>
    %41 = tpu.matmul %40, %22, %cst_30 {dimension_numbers = #tpu.dot_dimension_numbers<[2], [1], [1], [2], [0, 0, 0, 1, 1, 2], [0], [0]>} : vector<1x8x8xbf16>, vector<1x8x16xbf16>, vector<1x8x16xf32> -> vector<1x8x16xf32>
    %c0_31 = arith.constant 0 : index
    %c0_32 = arith.constant 0 : index
    %c0_33 = arith.constant 0 : index
    %42 = vector.load %arg16[%c0_31, %c0_32, %c0_33] : memref<1x8x16xf32, #tpu.memory_space<vmem>>, vector<1x8x16xf32>
    %43 = vector.broadcast %30 : vector<1x8x1xf32> to vector<1x8x16xf32>
    %44 = arith.mulf %43, %42 : vector<1x8x16xf32>
    %45 = arith.addf %44, %41 : vector<1x8x16xf32>
    %c0_34 = arith.constant 0 : index
    %c0_35 = arith.constant 0 : index
    %c0_36 = arith.constant 0 : index
    %46 = vector.load %arg16[%c0_34, %c0_35, %c0_36] : memref<1x8x16xf32, #tpu.memory_space<vmem>>, vector<1x8x16xf32>
    tpu.vector_store %arg16[%c0_34, %c0_35, %c0_36], %45 {strides = array<i32>} : memref<1x8x16xf32, #tpu.memory_space<vmem>>, vector<1x8x16xf32>,
    %c0_37 = arith.constant 0 : index
    %c0_38 = arith.constant 0 : index
    %c0_39 = arith.constant 0 : index
    %47 = vector.load %arg14[%c0_37, %c0_38, %c0_39] : memref<1x8x1xf32, #tpu.memory_space<vmem>>, vector<1x8x1xf32>
    tpu.vector_store %arg14[%c0_37, %c0_38, %c0_39], %28 {strides = array<i32>} : memref<1x8x1xf32, #tpu.memory_space<vmem>>, vector<1x8x1xf32>,
    %c3_i32 = arith.constant 3 : i32
    %48 = arith.cmpi eq, %arg2, %c3_i32 : i32
    %49 = arith.extui %48 : i1 to i32
    %c0_i32_40 = arith.constant 0 : i32
    %50 = arith.cmpi ne, %49, %c0_i32_40 : i32
    scf.if %50 {
      %c0_41 = arith.constant 0 : index
      %c0_42 = arith.constant 0 : index
      %c0_43 = arith.constant 0 : index
      %51 = vector.load %arg16[%c0_41, %c0_42, %c0_43] : memref<1x8x16xf32, #tpu.memory_space<vmem>>, vector<1x8x16xf32>
      %c0_44 = arith.constant 0 : index
      %c0_45 = arith.constant 0 : index
      %c0_46 = arith.constant 0 : index
      %52 = vector.load %arg15[%c0_44, %c0_45, %c0_46] : memref<1x8x1xf32, #tpu.memory_space<vmem>>, vector<1x8x1xf32>
      %53 = tpu.reciprocal %52 {approx = true} : vector<1x8x1xf32> -> vector<1x8x1xf32>
      %54 = vector.broadcast %53 : vector<1x8x1xf32> to vector<1x8x16xf32>
      %55 = arith.mulf %51, %54 : vector<1x8x16xf32>
      %c0_47 = arith.constant 0 : index
      %c0_48 = arith.constant 0 : index
      %c0_49 = arith.constant 0 : index
      %56 = vector.load %arg12[%c0_47, %c0_48, %c0_49] : memref<1x8x16xf32, #tpu.memory_space<vmem>>, vector<1x8x16xf32>
      tpu.vector_store %arg12[%c0_47, %c0_48, %c0_49], %55 {strides = array<i32>} : memref<1x8x16xf32, #tpu.memory_space<vmem>>, vector<1x8x16xf32>,
    } else {
    }
    return
  }
  func.func @transform_0(%arg0: i32, %arg1: i32, %arg2: i32) -> (i32, i32, i32) {
    %c0_i32 = arith.constant 0 : i32
    %c0_i32_0 = arith.constant 0 : i32
    return %arg0, %arg1, %c0_i32 : i32, i32, i32
  }
  func.func @transform_1(%arg0: i32, %arg1: i32, %arg2: i32) -> (i32, i32, i32) {
    %c0_i32 = arith.constant 0 : i32
    %c0_i32_0 = arith.constant 0 : i32
    return %arg0, %arg2, %c0_i32 : i32, i32, i32
  }
  func.func @transform_2(%arg0: i32, %arg1: i32, %arg2: i32) -> (i32, i32, i32) {
    %c0_i32 = arith.constant 0 : i32
    %c0_i32_0 = arith.constant 0 : i32
    return %arg0, %arg2, %c0_i32 : i32, i32, i32
  }
  func.func @transform_3(%arg0: i32, %arg1: i32, %arg2: i32) -> (i32, i32) {
    %c0_i32 = arith.constant 0 : i32
    %c0_i32_0 = arith.constant 0 : i32
    %c0_i32_1 = arith.constant 0 : i32
    return %c0_i32, %c0_i32_0 : i32, i32
  }
  func.func @transform_4(%arg0: i32, %arg1: i32, %arg2: i32) -> (i32, i32) {
    %c0_i32 = arith.constant 0 : i32
    %c0_i32_0 = arith.constant 0 : i32
    %c0_i32_1 = arith.constant 0 : i32
    return %c0_i32, %c0_i32_0 : i32, i32
  }
  func.func @transform_5(%arg0: i32, %arg1: i32, %arg2: i32) -> (i32, i32) {
    %c0_i32 = arith.constant 0 : i32
    %c0_i32_0 = arith.constant 0 : i32
    %c0_i32_1 = arith.constant 0 : i32
    return %c0_i32, %c0_i32_0 : i32, i32
  }
  func.func @transform_6(%arg0: i32, %arg1: i32, %arg2: i32) -> (i32, i32) {
    %c0_i32 = arith.constant 0 : i32
    %c0_i32_0 = arith.constant 0 : i32
    %c0_i32_1 = arith.constant 0 : i32
    return %c0_i32, %c0_i32_0 : i32, i32
  }
  func.func @transform_7(%arg0: i32, %arg1: i32, %arg2: i32) -> (i32, i32) {
    %c0_i32 = arith.constant 0 : i32
    %c0_i32_0 = arith.constant 0 : i32
    %c0_i32_1 = arith.constant 0 : i32
    return %c0_i32, %c0_i32_0 : i32, i32
  }
  func.func @transform_8(%arg0: i32, %arg1: i32, %arg2: i32) -> (i32, i32) {
    %c0_i32 = arith.constant 0 : i32
    %c0_i32_0 = arith.constant 0 : i32
    %c0_i32_1 = arith.constant 0 : i32
    return %c0_i32, %c0_i32_0 : i32, i32
  }
  func.func @transform_9(%arg0: i32, %arg1: i32, %arg2: i32) -> (i32, i32, i32) {
    %c0_i32 = arith.constant 0 : i32
    %c0_i32_0 = arith.constant 0 : i32
    return %arg0, %arg1, %c0_i32 : i32, i32, i32
  }
}

</mosaic_0001>

<bundles_post_ra>
// kernel: tpu_custom_call.1
= control target key start
LH: loop header
LB: loop body
LE: loop exit
PB: predicated region body
PF: predicated region fallthrough
CT: control target
= control target key end

     0   :  { %s1596_s0 = inlined_call_operand.vmem [shape: f32[2,32,32], index: 0, kind: input, shape index: {}]   ;;  %s1597_s1 = inlined_call_operand.hbm [shape: f32[2,32,32], index: 1, kind: input, shape index: {}]   ;;  %s1598_s2 = inlined_call_operand.hbm [shape: f32[2,32,32], index: 2, kind: input, shape index: {}]   ;;  %s1599_s3 = inlined_call_operand.vmem [shape: bf16[32,16], index: 3, kind: input, shape index: {}]   ;;  %s1600_s4 = inlined_call_operand.vmem [shape: f32[1,16], index: 4, kind: input, shape index: {}]   ;;  %s1601_s5 = inlined_call_operand.vmem [shape: bf16[32,16], index: 5, kind: input, shape index: {}]   ;;  %s1602_s6 = inlined_call_operand.vmem [shape: f32[1,16], index: 6, kind: input, shape index: {}]   ;;  %s1603_s7 = inlined_call_operand.vmem [shape: bf16[32,16], index: 7, kind: input, shape index: {}]   ;;  %s1604_s8 = inlined_call_operand.vmem [shape: f32[1,16], index: 8, kind: input, shape index: {}]   ;;  %s1605_s9 = inlined_call_operand.vmem [shape: f32[2,32,16], index: 9, kind: output, shape index: {}]  }
   0x1   :  { %1611 = sst [smem:[#allocation15_spill]] %s1599_s3 }
   0x2   :  { %1612 = sst [smem:[#allocation16_spill]] %s1600_s4 }
   0x3   :  { %1613 = sst [smem:[#allocation17_spill]] %s1601_s5 }
   0x4   :  { %1614 = sst [smem:[#allocation18_spill]] %s1602_s6 }
   0x5   :  { %1615 = sst [smem:[#allocation19_spill]] %s1603_s7 }
   0x6   :  { %1616 = sst [smem:[#allocation20_spill]] %s1604_s8 }
   0x7   :  { %14 = vsyncpa [#allocation7], 0 }
   0x8   :  { %16 = vsyncpa [#allocation7 + $0x1], 0 }
   0x9   :  { %17 = vsyncpa [#allocation9], 0 }
   0xa   :  { %19 = vsyncpa [#allocation9 + $0x1], 0  ;;  %s1363_s30 = smov 0   ;;  %s1365_s10 = smov 0  }
   0xb   :  { %s1367_s11 = smov 0   ;;  %s1369_s12 = smov 0  }
   0xc   :  { %s1371_s13 = smov 0   ;;  %s1373_s14 = smov 0  }
   0xd   :  { %s1375_s15 = smov 0   ;;  %s1377_s16 = smov 0  }
   0xe   :  { %s1379_s17 = smov 0   ;;  %s1381_s18 = smov 0  }
   0xf LB: > { %1617 = sst [smem:[#allocation12_spill]] %s1294_s16  ;;  %s962_s19 = sadd.s32 4294967295, %s1302_s18   ;;  %s1302_s18 = sphi %s1381_s18, %s25_s18   ;;  %s1298_s17 = sphi %s1379_s17, %s1640_s17   ;;  %s1294_s16 = sphi %s1377_s16, %s1633_s16   ;;  %s1290_s15 = sphi %s1375_s15, %s1639_s15   ;;  %s1286_s14 = sphi %s1373_s14, %s1638_s14   ;;  %s1282_s13 = sphi %s1371_s13, %s1631_s13   ;;  %s1278_s12 = sphi %s1369_s12, %s1637_s12   ;;  %s1274_s11 = sphi %s1367_s11, %s1636_s11   ;;  %s1270_s10 = sphi %s1365_s10, %s1635_s10   ;;  %s1266_s30 = sphi %s1363_s30, %s1634_s30  }
  0x10   : > { %s37_s20 = sadd.s32 1, %s1290_s15  ;;  %s40_s21 = sadd.s32 1, %s1294_s16 }
  0x11   : > { %p38_p0 = scmp.ge.s32.totalorder %s37_s20, 4  ;;  %s44_s22 = sadd.s32 1, %s1298_s17 }
  0x12   : > { %s81_s23 = sadd.s32 1, %s1274_s11  ;;  %p88_p1 = scmp.ne.s32.totalorder %s1274_s11, %s1270_s10 }
  0x13   : > { %s1642_s20 = smov (%p38_p0, %s37_s20), 0  ;;  %s1644_s21 = smov (!%p38_p0, %s40_s21), %s1294_s16 }
  0x14   : > { %1618 = sst [smem:[#allocation13_spill]] %s1642_s20  ;;  %s77_s24 = ssub.s32 %s1290_s15, %s1642_s20 }
  0x15   : > { %p42_p2 = scmp.ge.s32.totalorder %s1644_s21, 4  ;;  %p89_p3 = scmp.eq.s32.totalorder %s1302_s18, 0 }
  0x16   : > { %p94_p4 = scmp.ne.s32.totalorder %s1270_s10, %s1266_s30  ;;  %p95_p5 = scmp.eq.s32.totalorder %s962_s19, 0 }
  0x17   : > { %s1646_s21 = smov (%p42_p2, %s1644_s21), 0  ;;  %s1648_s22 = smov (!%p42_p2, %s44_s22), %s1298_s17 }
  0x18   : > { %1619 = sst [smem:[#allocation14_spill]] %s1646_s21  ;;  %p1428_p6 = por %p89_p3, %p88_p1 }
  0x19   : > { %p1432_p7 = por %p95_p5, %p94_p4  ;;  %p46_p8 = scmp.ge.s32.totalorder %s1648_s22, 2 }
  0x1a   : > { %p1057_p9 = scmp.lt.s32.totalorder %s1302_s18, 32  ;;  %s1438_s27 = sand.u32 1, %s1274_s11  }
  0x1b   : > { %s1650_s22 = smov (%p46_p8, %s1648_s22), 0  ;;  %s966_s28 = sshll.u32 %s1438_s27, 3 }
  0x1c   : > { %s76_s29 = ssub.s32 %s1298_s17, %s1650_s22  ;;  %s967_s19 = sshll.u32 %s1298_s17, 2 }
  0x1d   : > { %s78_s30 = sor.u32 %s77_s24, %s76_s29  ;;  %s338_s21 = sadd.s32 %s1290_s15, %s967_s19 }
  0x1e   : > { %p79_p10 = scmp.eq.s32.totalorder %s78_s30, 0  ;;  %s968_s20 = sshll.u32 %s338_s21, 7 }
  0x1f   : > { %s333_s16 = scalar_lea.vmem [#allocation6], %s966_s28  ;;  %s340_s4 = scalar_lea.hbm %s1597_s1, %s968_s20 }
  0x20   : > { %s342_s8 = sshll.u32 %s333_s16, 4  ;;  %p1459_p11 = pnand %p1057_p9, %p1428_p6  ;;  %s343_s8 = int_to_ptr.vmem [resolvable:$true] %s342_s8 }
  0x21   : > { %s1450_s7 = scalar_select %p79_p10, %s1274_s11, %s81_s23  }
  0x22   : > { %p972_p12 = scmp.ge.s32.totalorder %s1302_s18, 1  ;;  %p367_p13 = scmp.lt.s32.totalorder %s1302_s18, 33 }
  0x23   : > { %s330_s21 = scalar_lea.sflag [#allocation7], %s1438_s27  ;;  %p1162_p0 = pneg %p1459_p11 }
  0x24   : > { %s1173_s16 = scalar_lea.vmem %s343_s8, 128  ;;  %s1304_s5 = smov [#allocation6]  }
  0x25   : > { %p1174_p1 = scmp.ne.s32.totalorder %s343_s8, %s1173_s16  ;;  %s1178_s6 = sshll.u32 %s1304_s5, 4  ;;  %s1179_s6 = int_to_ptr.vmem [resolvable:$false] %s1178_s6 }
  0x26   : > { %s1180_s23 = scalar_lea.vmem %s1179_s6, 256  ;;  %p1181_p4 = scmp.lt.s32.totalorder %s343_s8, %s1179_s6 }
  0x27   : > { %p1176_p2 = pnand %p1174_p1, %p1162_p0  ;;  %p1182_p5 = scmp.lt.s32.totalorder %s1180_s23, %s1173_s16 }
  0x29   : > { %p1177_p3 = pneg %p1176_p2  ;;  %p1183_p6 = por %p1182_p5, %p1181_p4 }
  0x2b   : > { %p1184_p8 = pnand %p1183_p6, %p1177_p3 }
  0x2d   : > { %1187 = shalt.err (!%p1184_p8)
}
  0x2e   : > { %1053 = dma.hbm_to_vmem [thread:$0]  (!%p1459_p11), %s340_s4, 128, %s343_s8, %s330_s21  }
  0x2f   : > { %p1477_p9 = pnand %p972_p12, %p367_p13  ;;  %s360_s30 = scalar_lea.hbm %s1598_s2, %s968_s20 }
  0x30   : > { %s353_s19 = scalar_lea.vmem [#allocation8], %s966_s28  ;;  %s350_s5 = scalar_lea.sflag [#allocation9], %s1438_s27 }
  0x31   : > { %s362_s16 = sshll.u32 %s353_s19, 4  ;;  %s1305_s4 = smov [#allocation8]   ;;  %s363_s16 = int_to_ptr.vmem [resolvable:$true] %s362_s16 }
  0x32   : > { %s1201_s6 = scalar_lea.vmem %s363_s16, 128  ;;  %s1206_s8 = sshll.u32 %s1305_s4, 4  ;;  %s1207_s8 = int_to_ptr.vmem [resolvable:$false] %s1206_s8 }
  0x33   : > { %p1202_p10 = scmp.ne.s32.totalorder %s363_s16, %s1201_s6  ;;  %s1208_s21 = scalar_lea.vmem %s1207_s8, 256 }
  0x34   : > { %p1209_p12 = scmp.lt.s32.totalorder %s363_s16, %s1207_s8  ;;  %p1210_p13 = scmp.lt.s32.totalorder %s1208_s21, %s1201_s6 }
  0x35   : > { %p1204_p1 = pnand %p1202_p10, %p1162_p0 }
  0x36   : > { %p1211_p3 = por %p1210_p13, %p1209_p12 }
  0x37   : > { %p1205_p2 = pneg %p1204_p1 }
  0x39   : > { %p1212_p4 = pnand %p1211_p3, %p1205_p2 }
  0x3b   : > { %1215 = shalt.err (!%p1212_p4)
}
  0x3c   : > { %1056 = dma.hbm_to_vmem [thread:$0]  (!%p1459_p11), %s360_s30, 128, %s363_s16, %s350_s5  }
  0x3d   : > { %371 = sbr.rel (%p1477_p9) target bundleno = 1324 (0x52c), region = 56  ;;  %s373_s20 = sand.u32 (!%p1477_p9), 1, %s1270_s10  }
  0x3e   : > { %s973_s27 = sshll.u32 (!%p1477_p9), %s373_s20, 3  ;;  %s374_s28 = scalar_lea.sflag (!%p1477_p9), [#allocation7], %s373_s20 }
  0x3f   : > { %s1495_s23 = scalar_lea.vmem (!%p1477_p9), [#allocation6], %s973_s27 }
  0x42   : > { %1257 = dma.done.wait (%p1432_p7), %s374_s28, 128  }
  0x43   : > { %1259 = vsyncadd (%p1432_p7), %s374_s28, 4294967168  ;;  %s383_s25 = scalar_lea.sflag [#allocation9], %s373_s20  ;;  %s1501_s29 = scalar_lea.vmem [#allocation8], %s973_s27 }
  0x44   : > { %1261 = dma.done.wait (%p1432_p7), %s383_s25, 128  }
  0x45   : > { %1263 = vsyncadd (%p1432_p7), %s383_s25, 4294967168  ;;  %p437_p11 = scmp.lt.s32.totalorder %s1286_s14, 1  ;;  %p439_p0 = scmp.lt.s32.totalorder %s1282_s13, 3 }
  0x46   : > { %p979_p7 = scmp.ne.s32.totalorder %s1278_s12, 0 }
  0x47   : > { %s1652_s14 = smov (!%p437_p11, %s1286_s14), 1  ;;  %s1654_s13 = smov (!%p439_p0, %s1282_s13), 3 }
  0x48   : > { %s975_s3 = sshll.u32 %s1652_s14, 2  ;;  %457 = sbr.rel (%p979_p7) target bundleno = 286 (0x11e), region = 68 }
  0x49   : > { %s442_s24 = sadd.s32 %s975_s3, %s1654_s13  ;;  %s1624_s8 = sld [smem:[#allocation15_spill]] (!%p979_p7) }
  0x4a   : > { %s976_s30 = sshll.u32 %s442_s24, 3  ;;  %s1625_s25 = sld [smem:[#allocation16_spill]] (!%p979_p7) }
  0x4b   : > { %s444_s5 = scalar_lea.vmem %s1596_s0, %s976_s30  ;;  %s1517_s26 = scalar_lea.vmem %s1605_s9, %s976_s30 }
  0x4d   : > { %vm530_vm0 = vcmask 7168   ;;  %vm533_vm1 = vcmask 130048   ;;  %v1306_v0 = vmov 0.0   ;;  %v1307_v1 = vmov -inf   ;;  %v458_v4 = vld [vmem:[%s444_s5] sm:$0xff] }
  0x4e   : > { %1010 = vmatprep.subr.bf16.mxu0 %v1306_v0  ;;  %531 = vst.msk [vmem:[#allocation3] sm:$0xff] %vm530_vm0, %v1307_v1  ;;  %532 = vst.msk [vmem:[#allocation4] sm:$0xff] %vm530_vm0, %v1306_v0  ;;  %vm1308_vm2 = vmmov 0   ;;  %v459_v5 = vpack.c.bf16 %v458_v4, %v458_v4  ;;  %vm483_vm3 = vcmask 261120   ;;  %vm528_vm4 = vcmask 125952  }
  0x4f   : > { %534 = vst.msk [vmem:[#allocation5] sm:$0xff] %vm533_vm1, %v1306_v0  ;;  %v1145_v2 = vld [vmem:[%s1624_s8 + $0x8] sm:$0xff]   ;;  %1014 = vmatprep.mubr.msk.bf16.mxu0 %vm1308_vm2, %v1306_v0  ;;  %v1146_v3 = vld [vmem:[%s1624_s8] sm:$0xff]  }
  0x50   : > { %1011 = vmatpush3.bf16.msra.mxu0 %v1145_v2  ;;  %v980_v6 = vld [vmem:[%s1625_s25] ss:$0 sm:$0xff] }
  0x51   : > { %1012 = vmatprep.subr.bf16.mxu0 %v1306_v0 }
  0x54   : > { %1013 = vmatpush3.bf16.msra.mxu0 %v1146_v3 }
  0x57   : > { %1015 = vmatmul.mubr.msk.bf16.vlgmr.msra.gmra.mxu0 %vm483_vm3, %v459_v5 }
 0x117   : > { %v521_v7 = vpop.f32.mrf.mxu0 }
 0x118   : > { %v522_v8 = vadd.f32 %v980_v6, %v521_v7 }
 0x119   : > { %v1016_v9 = vpop.f32.mrf.mxu0 }
 0x11a   : > { %v527_v10 = vpack.c.bf16 %v522_v8, %v522_v8 }
 0x11b   : > { %v524_v11 = vpop.f32.mrf.mxu0 }
 0x11c   : > { %529 = vst.msk [vmem:[#allocation2] sm:$0xf] %vm528_vm4, %v527_v10 }
 0x11d   : > { %v1017_v12 = vpop.f32.mrf.mxu0 }
 0x11e PF: > { %s1626_s30 = sld [smem:[#allocation17_spill]]  ;;  %v1309_v14 = vmov 0.0   ;;  %vm1310_vm5 = vmmov 0   ;;  %v535_v16 = vld [vmem:[%s1495_s23] sm:$0xff]  ;;  %vm562_vm6 = vcmask 261120   ;;  %vm675_vm7 = vcmask 130048  }
 0x11f   : > { %1018 = vmatprep.subr.bf16.mxu0 %v1309_v14  ;;  %1026 = vmatprep.subr.bf16.mxu1 %v1309_v14  ;;  %v536_v17 = vpack.c.bf16 %v535_v16, %v535_v16  ;;  %s1628_s13 = sld [smem:[#allocation18_spill]]  ;;  %v537_v29 = vld [vmem:[%s1501_s29] sm:$0xff]  ;;  %vm723_vm8 = vcmask 64512   ;;  %v1311_v36 = vmov 0   ;;  %v722_v37 = vld [vmem:[#allocation3] sm:$0xff]  ;;  %vm745_vm9 = vcmask 7168  }
 0x120   : > { %1022 = vmatprep.mubr.msk.bf16.mxu0 %vm1310_vm5, %v1309_v14  ;;  %1030 = vmatprep.mubr.msk.bf16.mxu1 %vm1310_vm5, %v1309_v14  ;;  %s1629_s21 = sld [smem:[#allocation19_spill]]  ;;  %v538_v30 = vpack.c.bf16 %v537_v29, %v537_v29  ;;  %vm751_vm10 = vcmask 1043456   ;;  %v739_v57 = vld [vmem:[#allocation4] sm:$0xff]  ;;  %v795_v61 = vld [vmem:[#allocation5] sm:$0xff]  ;;  %p994_p5 = scmp.ne.s32.totalorder %s1278_s12, 3 }
 0x121   : > { %1147 = vset.pattern.permute.xlu0 %v1311_v36  ;;  %1148 = vset.pattern.permute.xlu1 %v1311_v36  ;;  %s1630_s25 = sld [smem:[#allocation20_spill]] }
 0x123   : > { %v674_v26 = vld [vmem:[#allocation2] sm:$0xf] }
 0x124   : > { %s1627_s19 = smov %s1626_s30  ;;  %v1149_v13 = vld [vmem:[%s1626_s30 + $0x8] sm:$0xff]  }
 0x125   : > { %1019 = vmatpush3.bf16.msra.mxu0 %v1149_v13  ;;  %v1150_v15 = vld [vmem:[%s1627_s19] sm:$0xff]  }
 0x126   : > { %1020 = vmatprep.subr.bf16.mxu0 %v1309_v14  ;;  %v984_v18 = vld [vmem:[%s1628_s13] ss:$0 sm:$0xff]  ;;  %v1151_v27 = vld [vmem:[%s1629_s21 + $0x8] sm:$0xff]  }
 0x127   : > { %1027 = vmatpush3.bf16.msra.mxu1 %v1151_v27  ;;  %v1152_v28 = vld [vmem:[%s1629_s21] sm:$0xff]  }
 0x128   : > { %1028 = vmatprep.subr.bf16.mxu1 %v1309_v14  ;;  %v988_v41 = vld [vmem:[%s1630_s25] ss:$0 sm:$0xff] }
 0x129   : > { %1021 = vmatpush3.bf16.msra.mxu0 %v1150_v15 }
 0x12a   : > { %1034 = vmatprep.subr.bf16.mxu0 %v1309_v14 }
 0x12b   : > { %1029 = vmatpush3.bf16.msra.mxu1 %v1152_v28 }
 0x12c   : > { %1023 = vmatmul.mubr.msk.bf16.vlgmr.msra.gmra.mxu0 %vm562_vm6, %v536_v17  ;;  %1040 = vmatprep.subr.bf16.mxu1 %v1309_v14 }
 0x12d   : > { %1036 = vmatprep.mubr.msk.bf16.mxu0 %vm1310_vm5, %v1309_v14 }
 0x12e   : > { %1031 = vmatmul.mubr.msk.bf16.vlgmr.msra.gmra.mxu1 %vm562_vm6, %v538_v30 }
 0x12f   : > { %1042 = vmatprep.mubr.msk.bf16.mxu1 %vm1310_vm5, %v1309_v14 }
 0x1ec   : > { %v600_v19 = vpop.f32.mrf.mxu0 }
 0x1ed   : > { %v601_v20 = vadd.f32 %v984_v18, %v600_v19 }
 0x1ee   : > { %v1024_v21 = vpop.f32.mrf.mxu0  ;;  %v667_v42 = vpop.f32.mrf.mxu1 }
 0x1ef   : > { %v606_v22 = vpack.c.bf16 %v601_v20, %v601_v20  ;;  %v668_v43 = vadd.f32 %v988_v41, %v667_v42 }
 0x1f0   : > { %v603_v23 = vpop.f32.mrf.mxu0  ;;  %v1032_v44 = vpop.f32.mrf.mxu1 }
 0x1f1   : > { %v680_v24 = vsel %vm675_vm7, %v606_v22, 0  ;;  %v673_v45 = vpack.c.bf16 %v668_v43, %v668_v43 }
 0x1f2   : > { %v1025_v25 = vpop.f32.mrf.mxu0  ;;  %1035 = vmatpush3.bf16.xpose.msra.mxu0 %v680_v24  ;;  %v670_v46 = vpop.f32.mrf.mxu1 }
 0x1f3   : > { %v753_v47 = vsel %vm751_vm10, %v673_v45, 0 }
 0x1f4   : > { %v1033_v48 = vpop.f32.mrf.mxu1  ;;  %1041 = vmatpush3.bf16.msra.mxu1 %v753_v47 }
 0x1f9   : > { %1037 = vmatmul.mubr.msk.bf16.vlgmr.msra.gmra.mxu0 %vm675_vm7, %v674_v26 }
 0x2b9   : > { %v716_v31 = vpop.f32.mrf.mxu0 }
 0x2ba   : > { %v724_v32 = vsel %vm723_vm8, %v716_v31, -inf }
 0x2bb   : > { %725 = vmax.xlane.f32.xlu0 %v724_v32  ;;  %v1038_v33 = vpop.f32.mrf.mxu0 }
 0x2bd   : > { %v719_v34 = vpop.f32.mrf.mxu0 }
 0x2bf   : > { %v1039_v35 = vpop.f32.mrf.mxu0 }
 0x344   : > { %v726_v38 = vpop.xlane.xlu0 %725 }
 0x345   : > { %v727_v39 = vmax.f32 %v722_v37, %v726_v38 }
 0x347   : > { %v728_v40 = vsub.f32 %v722_v37, %v727_v39  ;;  %804 = vst.msk [vmem:[#allocation3] sm:$0xff] %vm745_vm9, %v727_v39  ;;  %733 = vperm.xlu0 %1147, %v727_v39  }
 0x349   : > { %v729_v53 = vmul.f32 1.442695, %v728_v40 }
 0x3c2   : > { %v734_v49 = vpop.permute.xlu0 %733 }
 0x3c3   : > { %v736_v50 = vsub.f32 %v716_v31, %v734_v49 }
 0x3c5   : > { %v737_v51 = vmul.f32 1.442695, %v736_v50 }
 0x3c7   : > { %1153 = vpow2.f32 %v737_v51 }
 0x3c8   : > { %1155 = vpow2.f32 %v729_v53 }
 0x3d4   : > { %v1154_v52 = vpop.eup %1153 }
 0x3d5   : > { %v741_v54 = vsel %vm723_vm8, %v1154_v52, 0.0  ;;  %v747_v55 = vpack.c.bf16 %v1154_v52, %v1154_v52  ;;  %v1156_v56 = vpop.eup %1155 }
 0x3d6   : > { %742 = vadd.xlane.f32.xlu1 %v741_v54  ;;  %v740_v58 = vmul.f32 %v1156_v56, %v739_v57 }
 0x3d7   : > { %1043 = vmatmul.mubr.msk.bf16.vlgmr.msra.gmra.mxu1 %vm723_vm8, %v747_v55 }
 0x3e7   : > { %798 = vperm.xlu1 %1148, %v1156_v56  }
 0x45f   : > { %v743_v59 = vpop.xlane.xlu1 %742 }
 0x460   : > { %v744_v60 = vadd.f32 %v743_v59, %v740_v58 }
 0x462   : > { %746 = vst.msk [vmem:[#allocation4] sm:$0xff] %vm745_vm9, %v744_v60 }
 0x463   : > { %v799_v62 = vpop.permute.xlu1 %798 }
 0x464   : > { %v801_v63 = vmul.f32 %v799_v62, %v795_v61 }
 0x497   : > { %v789_v0 = vpop.f32.mrf.mxu1 }
 0x498   : > { %v802_v1 = vadd.f32 %v801_v63, %v789_v0 }
 0x499   : > { %v1044_v2 = vpop.f32.mrf.mxu1  ;;  %808 = sbr.rel (%p994_p5) target bundleno = 1324 (0x52c), region = 72 }
 0x49a   : > { %803 = vst.msk [vmem:[#allocation5] sm:$0xff] %vm675_vm7, %v802_v1 }
 0x49b   : > { %v792_v3 = vpop.f32.mrf.mxu1 }
 0x49d   : > { %v1045_v4 = vpop.f32.mrf.mxu1 }
 0x49e   : > { %v810_v5 = vld [vmem:[#allocation4] sm:$0xff]  ;;  %v1312_v6 = vmov 0  }
 0x49f   : > { %1157 = vset.pattern.permute.xlu0 %v1312_v6  ;;  %1158 = vrcp.f32 %v810_v5 }
 0x4a1   : > { %v809_v8 = vld [vmem:[#allocation5] sm:$0xff] }
 0x4ac   : > { %v1159_v7 = vpop.eup %1158 }
 0x4ad   : > { %814 = vperm.xlu0 %1157, %v1159_v7  }
 0x528   : > { %v815_v9 = vpop.permute.xlu0 %814 }
 0x529   : > { %v817_v10 = vmul.f32 %v815_v9, %v809_v8 }
 0x52b   : > { %818 = vst.msk [vmem:[%s1517_s26] sm:$0xff] %vm675_vm7, %v817_v10 }
 0x52c PF: > { %s25_s18 = sadd.s32 1, %s1302_s18   ;;  %s1631_s13 = sld [smem:[#allocation12_spill]] }
 0x52d   : > { %p22_p6 = scmp.ge.s32.totalorder %s25_s18, 34   ;;  %s1632_s3 = sld [smem:[#allocation13_spill]] }
 0x52e   : > { %s1633_s16 = sld [smem:[#allocation14_spill]]  ;;  %s1634_s30 = smov %s1270_s10 }
 0x52f   : > { %s1635_s10 = smov %s1274_s11  ;;  %s1636_s11 = smov %s1450_s7 }
 0x530   : > { %s1637_s12 = smov %s1290_s15  ;;  %s1638_s14 = smov %s1298_s17 }
 0x531   : > { %s1640_s17 = smov %s1650_s22  ;;  %24 = sbr.rel (!%p22_p6) target bundleno = 15 (0xf), region = 120 }
 0x533   : > { %s1639_s15 = smov %s1632_s3 }
 0x536   :  { %846 = vsyncpa [#allocation7], 1 }
 0x537   :  { %848 = vsyncpa [#allocation7 + $0x1], 1 }
 0x538   :  { %849 = vsyncpa [#allocation9], 1 }
 0x539   :  { %851 = vsyncpa [#allocation9 + $0x1], 1 }

</bundles_post_ra>
